<compile_context>
chip_gen: v5e
topology: v5e:2x2
jax: 0.10.0
libtpu: 0.0.40
codegen_flags: <defaults>
</compile_context>

<pallas_src>
import functools

import jax
import jax.numpy as jnp
from jax.experimental import pallas as pl
from jax.experimental.pallas import tpu as pltpu

# Pad value: exp(_NEG_FILL - global_max) underflows to exactly 0 for any
# realistic finite input, so padded elements never affect max or sum.
_NEG_FILL = -1e30


def _round_up(v: int, m: int) -> int:
    return (v + m - 1) // m * m


def _reduce_kernel(x_ref, m_out_ref, inv_out_ref, m_acc, s_acc):
    """Pass 1: online (global max, sum of exp(x - max)) over all tiles."""
    t = pl.program_id(0)

    @pl.when(t == 0)
    def _init():
        m_acc[...] = jnp.full_like(m_acc, -jnp.inf)
        s_acc[...] = jnp.zeros_like(s_acc)

    x = x_ref[...].astype(jnp.float32)           # DMA stays in input dtype
    tile_max = jnp.max(x)                        # XLU full reduce (scalar)
    m_prev = m_acc[...]                          # (1, 1)
    m_new = jnp.maximum(m_prev, tile_max)
    # Rescale the previous partial sum to the new max, add this tile.
    s_acc[...] = s_acc[...] * jnp.exp(m_prev - m_new) + jnp.sum(jnp.exp(x - m_new))
    m_acc[...] = m_new

    @pl.when(t == pl.num_programs(0) - 1)
    def _finalize():
        m_out_ref[...] = m_acc[...]
        # Reciprocal computed once for the whole array (single vreg, off the
        # hot loop) -> exact form keeps full f32 accuracy at no extra cost.
        inv_out_ref[...] = pl.reciprocal(s_acc[...], approx=False)


def _normalize_kernel(x_ref, m_ref, inv_ref, o_ref):
    """Pass 2: out = exp(x - max) * (1 / sum).  Pure elementwise, parallel."""
    x = x_ref[...].astype(jnp.float32)
    e = jnp.exp(x - m_ref[...])
    o_ref[...] = (e * inv_ref[...]).astype(o_ref.dtype)   # broadcast mul, no divide


@functools.partial(jax.jit, static_argnames=("lanes", "row_tile"))
def softmax(x: jax.Array, *, lanes: int = 512, row_tile: int = 512) -> jax.Array:
    """Global (all-elements) softmax, same semantics as the PyTorch module."""
    orig_shape = x.shape
    orig_dtype = x.dtype                     # expected floating point
    n = x.size
    itemsize = jnp.dtype(orig_dtype).itemsize
    sub = max(8, 32 // itemsize)             # sublane multiple: 8 f32, 16 bf16

    # --- 2-D, lane/sublane-dense layout with minimal padding ---------------
    cols = min(lanes, _round_up(n, 128))     # lane-dense last dim (mult of 128)
    rows = pl.cdiv(n, cols)
    n_tiles = pl.cdiv(rows, row_tile)
    tm = _round_up(pl.cdiv(rows, n_tiles), sub)   # rows per tile (mult of sub)
    rows_p = tm * n_tiles
    total = rows_p * cols

    flat = x.reshape(-1)
    if total != n:
        flat = jnp.pad(flat, (0, total - n), constant_values=_NEG_FILL)
    x2d = flat.reshape(rows_p, cols)

    tile_bytes = tm * cols * itemsize        # ~1 MiB at defaults (f32)
    stat = jax.ShapeDtypeStruct((1, 1), jnp.float32)

    # --- pass 1: global max + sum(exp(x - max)), sequential over tiles -----
    m, inv_sum = pl.pallas_call(
        _reduce_kernel,
        out_shape=(stat, stat),
        grid=(n_tiles,),
        in_specs=[pl.BlockSpec((tm, cols), lambda t: (t, 0))],
        out_specs=(pl.BlockSpec((1, 1), lambda t: (0, 0)),
                   pl.BlockSpec((1, 1), lambda t: (0, 0))),
        scratch_shapes=[pltpu.VMEM((1, 1), jnp.float32),   # running max
                        pltpu.VMEM((1, 1), jnp.float32)],  # running sum
        compiler_params=pltpu.CompilerParams(
            dimension_semantics=("arbitrary",),
            vmem_limit_bytes=min(48 << 20, max(8 << 20, 2 * tile_bytes + (4 << 20)))),
        cost_estimate=pl.CostEstimate(
            flops=3 * total,
            transcendentals=total + 1,
            bytes_accessed=total * itemsize + 8),
    )(x2d)

    # --- pass 2: normalize (elementwise, megacore-parallel on v7x) ---------
    out2d = pl.pallas_call(
        _normalize_kernel,
        out_shape=jax.ShapeDtypeStruct((rows_p, cols), orig_dtype),
        grid=(n_tiles,),
        in_specs=[pl.BlockSpec((tm, cols), lambda t: (t, 0)),
                  pl.BlockSpec((1, 1), lambda t: (0, 0)),
                  pl.BlockSpec((1, 1), lambda t: (0, 0))],
        out_specs=pl.BlockSpec((tm, cols), lambda t: (t, 0)),
        compiler_params=pltpu.CompilerParams(
            dimension_semantics=("parallel",),
            vmem_limit_bytes=min(48 << 20, max(8 << 20, 4 * tile_bytes + (4 << 20)))),
        cost_estimate=pl.CostEstimate(
            flops=2 * total,
            transcendentals=total,
            bytes_accessed=2 * total * itemsize + 8),
    )(x2d, m, inv_sum)

    # Strip padding and restore the original shape.
    return out2d.reshape(-1)[:n].reshape(orig_shape)


if __name__ == "__main__":
    key = jax.random.PRNGKey(0)

    # Main example: small 4-D tensor, global softmax over all 2048 elements.
    x = jax.random.normal(key, (2, 4, 16, 16), dtype=jnp.float32)
    y = jax.block_until_ready(softmax(x))

    # Pure-JAX reference with the module's literal semantics (exp / sum(exp)).
    ref = jnp.exp(x) / jnp.sum(jnp.exp(x))
    assert y.shape == x.shape and y.dtype == x.dtype
    assert jnp.allclose(y, ref, rtol=1e-4, atol=1e-8)
    assert jnp.allclose(jnp.sum(y), 1.0, atol=1e-5)

    # Second check: ragged size (padding path) + multiple tiles (small tiles
    # force the online max/sum accumulation across 3 grid steps).
    k2 = jax.random.split(key)[0]
    x2 = jax.random.normal(k2, (3, 1000), dtype=jnp.float32) * 4.0
    y2 = jax.block_until_ready(softmax(x2, lanes=128, row_tile=8))
    ref2 = jnp.exp(x2) / jnp.sum(jnp.exp(x2))
    assert jnp.allclose(y2, ref2, rtol=1e-4, atol=1e-9)
    assert jnp.allclose(jnp.sum(y2), 1.0, atol=1e-5)

    print("KERNEL_OK")
</pallas_src>

<mosaic_0001>
module attributes {stable_mosaic.version = 11 : i64} {
  func.func @_reduce_kernel(%arg0: i32, %arg1: memref<8x512xf32, #tpu.memory_space<vmem>>, %arg2: memref<1x1xf32, #tpu.memory_space<vmem>>, %arg3: memref<1x1xf32, #tpu.memory_space<vmem>>, %arg4: memref<1x1xf32, #tpu.memory_space<vmem>>, %arg5: memref<1x1xf32, #tpu.memory_space<vmem>>) attributes {dimension_semantics = [#tpu.dimension_semantics<arbitrary>], iteration_bounds = array<i64: 1>, scalar_prefetch = 0 : i64, scratch_operands = 2 : i64, tpu.core_type = #tpu.core_type<tc>, window_params = [{transform_indices = @transform_0, window_bounds = array<i64: 8, 512>}, {pipeline_mode = #tpu.pipeline_mode<synchronous>, transform_indices = @transform_1, window_bounds = array<i64: 1, 1>}, {pipeline_mode = #tpu.pipeline_mode<synchronous>, transform_indices = @transform_2, window_bounds = array<i64: 1, 1>}]} {
    %c0_i32 = arith.constant 0 : i32
    %0 = arith.cmpi eq, %arg0, %c0_i32 : i32
    %1 = arith.extui %0 : i1 to i32
    %c0_i32_0 = arith.constant 0 : i32
    %2 = arith.cmpi ne, %1, %c0_i32_0 : i32
    scf.if %2 {
      %cst_13 = arith.constant 0xFF800000 : f32
      %29 = vector.broadcast %cst_13 : f32 to vector<1x1xf32>
      %c0_14 = arith.constant 0 : index
      %c0_15 = arith.constant 0 : index
      %30 = vector.load %arg4[%c0_14, %c0_15] : memref<1x1xf32, #tpu.memory_space<vmem>>, vector<1x1xf32>
      tpu.vector_store %arg4[%c0_14, %c0_15], %29 {strides = array<i32>} : memref<1x1xf32, #tpu.memory_space<vmem>>, vector<1x1xf32>,
      %cst_16 = arith.constant 0.000000e+00 : f32
      %31 = vector.broadcast %cst_16 : f32 to vector<1x1xf32>
      %c0_17 = arith.constant 0 : index
      %c0_18 = arith.constant 0 : index
      %32 = vector.load %arg5[%c0_17, %c0_18] : memref<1x1xf32, #tpu.memory_space<vmem>>, vector<1x1xf32>
      tpu.vector_store %arg5[%c0_17, %c0_18], %31 {strides = array<i32>} : memref<1x1xf32, #tpu.memory_space<vmem>>, vector<1x1xf32>,
    } else {
    }
    %c0 = arith.constant 0 : index
    %c0_1 = arith.constant 0 : index
    %3 = vector.load %arg1[%c0, %c0_1] : memref<8x512xf32, #tpu.memory_space<vmem>>, vector<8x512xf32>
    %4 = vector.shape_cast %3 : vector<8x512xf32> to vector<1x8x512xf32>
    %cst = arith.constant dense<0xFF800000> : vector<1xf32>
    %5 = vector.multi_reduction <maximumf>, %4, %cst [1, 2] : vector<1x8x512xf32> to vector<1xf32>
    %6 = vector.shape_cast %5 : vector<1xf32> to vector<1x1x1xf32>
    %7 = vector.extract %6[0, 0, 0] : f32 from vector<1x1x1xf32>
    %c0_2 = arith.constant 0 : index
    %c0_3 = arith.constant 0 : index
    %8 = vector.load %arg4[%c0_2, %c0_3] : memref<1x1xf32, #tpu.memory_space<vmem>>, vector<1x1xf32>
    %9 = vector.broadcast %7 : f32 to vector<1x1xf32>
    %10 = arith.maximumf %8, %9 : vector<1x1xf32>
    %c0_4 = arith.constant 0 : index
    %c0_5 = arith.constant 0 : index
    %11 = vector.load %arg5[%c0_4, %c0_5] : memref<1x1xf32, #tpu.memory_space<vmem>>, vector<1x1xf32>
    %12 = arith.subf %8, %10 : vector<1x1xf32>
    %13 = math.exp %12 : vector<1x1xf32>
    %14 = arith.mulf %11, %13 : vector<1x1xf32>
    %15 = vector.broadcast %10 : vector<1x1xf32> to vector<8x512xf32>
    %16 = arith.subf %3, %15 : vector<8x512xf32>
    %17 = math.exp %16 : vector<8x512xf32>
    %18 = vector.shape_cast %17 : vector<8x512xf32> to vector<1x8x512xf32>
    %cst_6 = arith.constant dense<0.000000e+00> : vector<1xf32>
    %19 = vector.multi_reduction <add>, %18, %cst_6 [1, 2] : vector<1x8x512xf32> to vector<1xf32>
    %20 = vector.shape_cast %19 : vector<1xf32> to vector<1x1x1xf32>
    %21 = vector.extract %20[0, 0, 0] : f32 from vector<1x1x1xf32>
    %22 = vector.broadcast %21 : f32 to vector<1x1xf32>
    %23 = arith.addf %14, %22 : vector<1x1xf32>
    %c0_7 = arith.constant 0 : index
    %c0_8 = arith.constant 0 : index
    %24 = vector.load %arg5[%c0_7, %c0_8] : memref<1x1xf32, #tpu.memory_space<vmem>>, vector<1x1xf32>
    tpu.vector_store %arg5[%c0_7, %c0_8], %23 {strides = array<i32>} : memref<1x1xf32, #tpu.memory_space<vmem>>, vector<1x1xf32>,
    %c0_9 = arith.constant 0 : index
    %c0_10 = arith.constant 0 : index
    %25 = vector.load %arg4[%c0_9, %c0_10] : memref<1x1xf32, #tpu.memory_space<vmem>>, vector<1x1xf32>
    tpu.vector_store %arg4[%c0_9, %c0_10], %10 {strides = array<i32>} : memref<1x1xf32, #tpu.memory_space<vmem>>, vector<1x1xf32>,
    %c0_i32_11 = arith.constant 0 : i32
    %26 = arith.cmpi eq, %arg0, %c0_i32_11 : i32
    %27 = arith.extui %26 : i1 to i32
    %c0_i32_12 = arith.constant 0 : i32
    %28 = arith.cmpi ne, %27, %c0_i32_12 : i32
    scf.if %28 {
      %c0_13 = arith.constant 0 : index
      %c0_14 = arith.constant 0 : index
      %29 = vector.load %arg4[%c0_13, %c0_14] : memref<1x1xf32, #tpu.memory_space<vmem>>, vector<1x1xf32>
      %c0_15 = arith.constant 0 : index
      %c0_16 = arith.constant 0 : index
      %30 = vector.load %arg2[%c0_15, %c0_16] : memref<1x1xf32, #tpu.memory_space<vmem>>, vector<1x1xf32>
      tpu.vector_store %arg2[%c0_15, %c0_16], %29 {strides = array<i32>} : memref<1x1xf32, #tpu.memory_space<vmem>>, vector<1x1xf32>,
      %c0_17 = arith.constant 0 : index
      %c0_18 = arith.constant 0 : index
      %31 = vector.load %arg5[%c0_17, %c0_18] : memref<1x1xf32, #tpu.memory_space<vmem>>, vector<1x1xf32>
      %32 = tpu.reciprocal %31 : vector<1x1xf32> -> vector<1x1xf32>
      %c0_19 = arith.constant 0 : index
      %c0_20 = arith.constant 0 : index
      %33 = vector.load %arg3[%c0_19, %c0_20] : memref<1x1xf32, #tpu.memory_space<vmem>>, vector<1x1xf32>
      tpu.vector_store %arg3[%c0_19, %c0_20], %32 {strides = array<i32>} : memref<1x1xf32, #tpu.memory_space<vmem>>, vector<1x1xf32>,
    } else {
    }
    return
  }
  func.func @transform_0(%arg0: i32) -> (i32, i32) {
    %c0_i32 = arith.constant 0 : i32
    %c0_i32_0 = arith.constant 0 : i32
    return %arg0, %c0_i32 : i32, i32
  }
  func.func @transform_1(%arg0: i32) -> (i32, i32) {
    %c0_i32 = arith.constant 0 : i32
    %c0_i32_0 = arith.constant 0 : i32
    %c0_i32_1 = arith.constant 0 : i32
    return %c0_i32, %c0_i32_0 : i32, i32
  }
  func.func @transform_2(%arg0: i32) -> (i32, i32) {
    %c0_i32 = arith.constant 0 : i32
    %c0_i32_0 = arith.constant 0 : i32
    %c0_i32_1 = arith.constant 0 : i32
    return %c0_i32, %c0_i32_0 : i32, i32
  }
}

module attributes {stable_mosaic.version = 11 : i64} {
  func.func @_normalize_kernel(%arg0: i32, %arg1: memref<8x512xf32, #tpu.memory_space<vmem>>, %arg2: memref<1x1xf32, #tpu.memory_space<vmem>>, %arg3: memref<1x1xf32, #tpu.memory_space<vmem>>, %arg4: memref<8x512xf32, #tpu.memory_space<vmem>>) attributes {dimension_semantics = [#tpu.dimension_semantics<parallel>], iteration_bounds = array<i64: 1>, scalar_prefetch = 0 : i64, scratch_operands = 0 : i64, tpu.core_type = #tpu.core_type<tc>, window_params = [{transform_indices = @transform_0, window_bounds = array<i64: 8, 512>}, {pipeline_mode = #tpu.pipeline_mode<synchronous>, transform_indices = @transform_1, window_bounds = array<i64: 1, 1>}, {pipeline_mode = #tpu.pipeline_mode<synchronous>, transform_indices = @transform_2, window_bounds = array<i64: 1, 1>}, {transform_indices = @transform_3, window_bounds = array<i64: 8, 512>}]} {
    %c0 = arith.constant 0 : index
    %c0_0 = arith.constant 0 : index
    %0 = vector.load %arg1[%c0, %c0_0] : memref<8x512xf32, #tpu.memory_space<vmem>>, vector<8x512xf32>
    %c0_1 = arith.constant 0 : index
    %c0_2 = arith.constant 0 : index
    %1 = vector.load %arg2[%c0_1, %c0_2] : memref<1x1xf32, #tpu.memory_space<vmem>>, vector<1x1xf32>
    %2 = vector.broadcast %1 : vector<1x1xf32> to vector<8x512xf32>
    %3 = arith.subf %0, %2 : vector<8x512xf32>
    %4 = math.exp %3 : vector<8x512xf32>
    %c0_3 = arith.constant 0 : index
    %c0_4 = arith.constant 0 : index
    %5 = vector.load %arg3[%c0_3, %c0_4] : memref<1x1xf32, #tpu.memory_space<vmem>>, vector<1x1xf32>
    %6 = vector.broadcast %5 : vector<1x1xf32> to vector<8x512xf32>
    %7 = arith.mulf %4, %6 : vector<8x512xf32>
    %c0_5 = arith.constant 0 : index
    %c0_6 = arith.constant 0 : index
    %8 = vector.load %arg4[%c0_5, %c0_6] : memref<8x512xf32, #tpu.memory_space<vmem>>, vector<8x512xf32>
    tpu.vector_store %arg4[%c0_5, %c0_6], %7 {strides = array<i32>} : memref<8x512xf32, #tpu.memory_space<vmem>>, vector<8x512xf32>,
    return
  }
  func.func @transform_0(%arg0: i32) -> (i32, i32) {
    %c0_i32 = arith.constant 0 : i32
    %c0_i32_0 = arith.constant 0 : i32
    return %arg0, %c0_i32 : i32, i32
  }
  func.func @transform_1(%arg0: i32) -> (i32, i32) {
    %c0_i32 = arith.constant 0 : i32
    %c0_i32_0 = arith.constant 0 : i32
    %c0_i32_1 = arith.constant 0 : i32
    return %c0_i32, %c0_i32_0 : i32, i32
  }
  func.func @transform_2(%arg0: i32) -> (i32, i32) {
    %c0_i32 = arith.constant 0 : i32
    %c0_i32_0 = arith.constant 0 : i32
    %c0_i32_1 = arith.constant 0 : i32
    return %c0_i32, %c0_i32_0 : i32, i32
  }
  func.func @transform_3(%arg0: i32) -> (i32, i32) {
    %c0_i32 = arith.constant 0 : i32
    %c0_i32_0 = arith.constant 0 : i32
    return %arg0, %c0_i32 : i32, i32
  }
}

</mosaic_0001>

<bundles_post_ra>
// kernel: softmax.2
= control target key start
LH: loop header
LB: loop body
LE: loop exit
PB: predicated region body
PF: predicated region fallthrough
CT: control target
= control target key end

     0   :  { %8 = vsyncpa [#allocation5], 0  ;;  %s249_s0 = inlined_call_operand.vmem [shape: f32[8,512], index: 0, kind: input, shape index: {}]   ;;  %s250_s1 = inlined_call_operand.hbm [shape: f32[1,1], index: 1, kind: output, shape index: {0}]   ;;  %s251_s2 = inlined_call_operand.hbm [shape: f32[1,1], index: 2, kind: output, shape index: {1}]  }
   0x1   :  { %v19_v0 = vld [vmem:[%s249_s0] sm:$0xff]  ;;  %v20_v1 = vld [vmem:[%s249_s0 + $0x8] sm:$0xff]  ;;  %v21_v2 = vld [vmem:[%s249_s0 + $0x10] sm:$0xff] }
   0x2   :  { %v22_v3 = vld [vmem:[%s249_s0 + $0x18] sm:$0xff]  ;;  %v23_v4 = vmax.f32 %v19_v0, %v20_v1 }
   0x3   :  { %9 = vsyncpa [#allocation7], 0  ;;  %v24_v5 = vmax.f32 %v21_v2, %v22_v3  ;;  %vm16_vm0 = vcmask 0   ;;  %v205_v7 = vmov -inf   ;;  %v206_v15 = vmov 0   ;;  %s106_s19 = sshll.u32 %s250_s1, 4  ;;  %s107_s19 = int_to_ptr.hbm [resolvable:$true] %s106_s19 }
   0x4   :  { %17 = vst.msk [vmem:[#allocation2] sm:$0x1] %vm16_vm0, %v205_v7  ;;  %140 = vset.pattern.permute.xlu0 %v206_v15  ;;  %v207_v16 = vmov 0.0   ;;  %s208_s20 = smov [#allocation4]   ;;  %s209_s1 = smov [#allocation6]  }
   0x5   :  { %v25_v6 = vmax.f32 %v23_v4, %v24_v5  ;;  %18 = vst.msk [vmem:[#allocation3] sm:$0x1] %vm16_vm0, %v207_v16  ;;  %s104_s21 = sshll.u32 %s208_s20, 4  ;;  %s115_s23 = sshll.u32 %s209_s1, 4  ;;  %s105_s21 = int_to_ptr.vmem [resolvable:$true] %s104_s21  ;;  %s116_s23 = int_to_ptr.vmem [resolvable:$true] %s115_s23 }
   0x6   :  { %s117_s26 = sshll.u32 %s251_s2, 4  ;;  %s118_s26 = int_to_ptr.hbm [resolvable:$true] %s117_s26 }
   0x7   :  { %26 = vmax.xlane.f32.xlu0 %v25_v6 }
   0xb   :  { %v35_v17 = vld [vmem:[#allocation2] sm:$0x1] }
   0xc   :  { %v38_v48 = vld [vmem:[#allocation3] sm:$0x1] }
  0x7a   :  { %v27_v8 = vpop.xlane.xlu0 %26 }
  0x7b   :  { %v28_v9 = vrot.slane %v27_v8, 4 }
  0x7d   :  { %v29_v10 = vmax.f32 %v27_v8, %v28_v9 }
  0x7f   :  { %v30_v11 = vrot.slane %v29_v10, 2 }
  0x81   :  { %v31_v12 = vmax.f32 %v29_v10, %v30_v11 }
  0x83   :  { %v32_v13 = vrot.slane %v31_v12, 1 }
  0x85   :  { %v33_v14 = vmax.f32 %v31_v12, %v32_v13 }
  0x87   :  { %131 = vpush %v33_v14 }
  0xb8   :  { %s132_s0 = spop %131 }
  0xb9   :  { %v36_v18 = vstv %s132_s0 }
  0xba   :  { %v37_v19 = vmax.f32 %v35_v17, %v36_v18 }
  0xbc   :  { %v39_v20 = vsub.f32 %v35_v17, %v37_v19  ;;  %77 = vst.msk [vmem:[#allocation2] sm:$0x1] %vm16_vm0, %v37_v19  ;;  %v44_v21 = vperm.slane %v37_v19, 0 }
  0xbe   :  { %46 = vperm.xlu0 %140, %v44_v21   ;;  %v40_v46 = vmul.f32 1.442695, %v39_v20 }
  0xc3   :  { %v81_v22 = vld [vmem:[#allocation2] sm:$0x1] }
  0xc4   :  { %82 = vst.msk [vmem:[#allocation4] sm:$0x1] %vm16_vm0, %v81_v22 }
  0xc5   :  { %109 = dma.vmem_to_hbm [thread:$0]  %s105_s21, 16, %s107_s19, [#allocation5]  }
 0x130   :  { %v47_v23 = vpop.permute.xlu0 %46 }
 0x131   :  { %v49_v24 = vsub.f32 %v19_v0, %v47_v23  ;;  %v50_v25 = vsub.f32 %v20_v1, %v47_v23  ;;  %v51_v26 = vsub.f32 %v21_v2, %v47_v23  ;;  %v52_v27 = vsub.f32 %v22_v3, %v47_v23 }
 0x133   :  { %v53_v28 = vmul.f32 1.442695, %v49_v24  ;;  %v55_v29 = vmul.f32 1.442695, %v50_v25  ;;  %v57_v30 = vmul.f32 1.442695, %v51_v26 }
 0x134   :  { %v59_v31 = vmul.f32 1.442695, %v52_v27 }
 0x135   :  { %141 = vpow2.f32 %v53_v28 }
 0x136   :  { %143 = vpow2.f32 %v55_v29 }
 0x137   :  { %145 = vpow2.f32 %v57_v30 }
 0x138   :  { %147 = vpow2.f32 %v59_v31 }
 0x139   :  { %149 = vpow2.f32 %v40_v46 }
 0x13b   :  { %v142_v32 = vpop.eup %141 }
 0x13c   :  { %v144_v33 = vpop.eup %143 }
 0x13d   :  { %v61_v34 = vadd.f32 %v144_v33, %v142_v32  ;;  %v146_v35 = vpop.eup %145 }
 0x13e   :  { %v148_v37 = vpop.eup %147 }
 0x13f   :  { %v62_v36 = vadd.f32 %v146_v35, %v61_v34  ;;  %v150_v47 = vpop.eup %149 }
 0x140   :  { %v42_v49 = vmul.f32 %v150_v47, %v38_v48 }
 0x141   :  { %v63_v38 = vadd.f32 %v148_v37, %v62_v36 }
 0x143   :  { %64 = vadd.xlane.f32.xlu1 %v63_v38 }
 0x1b6   :  { %v65_v39 = vpop.xlane.xlu1 %64 }
 0x1b7   :  { %v66_v40 = vrot.slane %v65_v39, 4 }
 0x1b9   :  { %v67_v41 = vadd.f32 %v66_v40, %v65_v39 }
 0x1bb   :  { %v68_v42 = vrot.slane %v67_v41, 2 }
 0x1bd   :  { %v69_v43 = vadd.f32 %v68_v42, %v67_v41 }
 0x1bf   :  { %v70_v44 = vrot.slane %v69_v43, 1 }
 0x1c1   :  { %v71_v45 = vadd.f32 %v70_v44, %v69_v43 }
 0x1c3   :  { %133 = vpush %v71_v45 }
 0x1f4   :  { %s134_s22 = spop %133 }
 0x1f5   :  { %v73_v50 = vstv %s134_s22 }
 0x1f6   :  { %v74_v51 = vadd.f32 %v73_v50, %v42_v49 }
 0x1f8   :  { %76 = vst.msk [vmem:[#allocation3] sm:$0x1] %vm16_vm0, %v74_v51 }
 0x1ff   :  { %v83_v52 = vld [vmem:[#allocation3] sm:$0x1] }
 0x200   :  { %151 = vrcp.f32 %v83_v52  ;;  %v95_v56 = vand.u32 2147483648, %v83_v52  ;;  %v93_v58 = vand.u32 2147483647, %v83_v52  ;;  %vm89_vm2 = vweird.f32 %v83_v52 }
 0x202   :  { %v96_v60 = vor.u32 1.1754944e-38, %v95_v56  ;;  %vm94_vm4 = vcmp.eq.f32.partialorder %v93_v58, 8.507059e+37 }
 0x206   :  { %v152_v53 = vpop.eup %151 }
 0x207   :  { %v85_v54 = vmul.f32 %v152_v53, %v83_v52  ;;  %vm90_vm1 = vweird.f32 %v152_v53 }
 0x208   :  { %vm91_vm3 = vmor %vm89_vm2, %vm90_vm1 }
 0x209   :  { %v86_v55 = vsub.f32 1.0, %v85_v54 }
 0x20b   :  { %v87_v57 = vmul.f32 %v152_v53, %v86_v55 }
 0x20d   :  { %v88_v59 = vadd.f32 %v152_v53, %v87_v57 }
 0x20f   :  { %v92_v61 = vsel %vm91_vm3, %v152_v53, %v88_v59 }
 0x210   :  { %v97_v62 = vsel %vm94_vm4, %v96_v60, %v92_v61 }
 0x211   :  { %98 = vst.msk [vmem:[#allocation6] sm:$0x1] %vm16_vm0, %v97_v62 }
 0x212   :  { %120 = dma.vmem_to_hbm [thread:$0]  %s116_s23, 16, %s118_s26, [#allocation7]  }
 0x213   :  { %201 = dma.done.wait [#allocation5], 16  }
 0x214   :  { %202 = vsyncadd [#allocation5], 4294967280 }
 0x215   :  { %203 = dma.done.wait [#allocation7], 16  }
 0x216   :  { %204 = vsyncadd [#allocation7], 4294967280 }
 0x217   :  { %129 = vsyncpa [#allocation5], 1 }
 0x218   :  { %130 = vsyncpa [#allocation7], 1 }

// kernel: softmax.3
= control target key start
LH: loop header
LB: loop body
LE: loop exit
PB: predicated region body
PF: predicated region fallthrough
CT: control target
= control target key end

     0   :  { %v72_v0 = vmov 0   ;;  %s123_s1 = inlined_call_operand.<no memory space> [shape: f32[1,1], index: 1, kind: input, shape index: {}]   ;;  %s124_s2 = inlined_call_operand.<no memory space> [shape: f32[1,1], index: 2, kind: input, shape index: {}]   ;;  %s125_s0 = inlined_call_operand.vmem [shape: f32[8,512], index: 0, kind: input, shape index: {}]   ;;  %s126_s3 = inlined_call_operand.vmem [shape: f32[8,512], index: 3, kind: output, shape index: {}]  }
   0x1   :  { %61 = vset.pattern.permute.xlu0 %v72_v0  ;;  %v8_v1 = vstv %s123_s1  ;;  %v10_v2 = vstv %s124_s2  ;;  %v18_v5 = vld [vmem:[%s125_s0] sm:$0xff]  ;;  %v19_v6 = vld [vmem:[%s125_s0 + $0x8] sm:$0xff] }
   0x2   :  { %9 = vst [vmem:[#allocation2] sm:$0x1] %v8_v1  ;;  %v20_v7 = vld [vmem:[%s125_s0 + $0x10] sm:$0xff]  ;;  %v21_v8 = vld [vmem:[%s125_s0 + $0x18] sm:$0xff] }
   0x3   :  { %11 = vst [vmem:[#allocation3] sm:$0x1] %v10_v2 }
   0x9   :  { %v62_v3 = vld [vmem:[#allocation2] ss:$0 sm:$0xff] }
   0xa   :  { %26 = vperm.xlu0 %61, %v62_v3   ;;  %v63_v4 = vld [vmem:[#allocation3] ss:$0 sm:$0xff] }
  0x12   :  { %45 = vperm.xlu0 %61, %v63_v4  }
  0x7c   :  { %v27_v9 = vpop.permute.xlu0 %26 }
  0x7d   :  { %v29_v10 = vsub.f32 %v18_v5, %v27_v9  ;;  %v30_v11 = vsub.f32 %v19_v6, %v27_v9  ;;  %v31_v12 = vsub.f32 %v20_v7, %v27_v9  ;;  %v32_v13 = vsub.f32 %v21_v8, %v27_v9 }
  0x7f   :  { %v33_v14 = vmul.f32 1.442695, %v29_v10  ;;  %v35_v15 = vmul.f32 1.442695, %v30_v11  ;;  %v37_v16 = vmul.f32 1.442695, %v31_v12 }
  0x80   :  { %v39_v17 = vmul.f32 1.442695, %v32_v13 }
  0x81   :  { %64 = vpow2.f32 %v33_v14 }
  0x82   :  { %66 = vpow2.f32 %v35_v15 }
  0x83   :  { %68 = vpow2.f32 %v37_v16 }
  0x84   :  { %70 = vpow2.f32 %v39_v17  ;;  %v46_v19 = vpop.permute.xlu0 %45 }
  0x87   :  { %v65_v18 = vpop.eup %64 }
  0x88   :  { %v67_v20 = vpop.eup %66  ;;  %v48_v21 = vmul.f32 %v65_v18, %v46_v19 }
  0x89   :  { %v69_v22 = vpop.eup %68  ;;  %v49_v23 = vmul.f32 %v67_v20, %v46_v19 }
  0x8a   :  { %v71_v24 = vpop.eup %70  ;;  %v50_v25 = vmul.f32 %v69_v22, %v46_v19  ;;  %52 = vst [vmem:[%s126_s3] sm:$0xff] %v48_v21 }
  0x8b   :  { %v51_v26 = vmul.f32 %v71_v24, %v46_v19  ;;  %53 = vst [vmem:[%s126_s3 + $0x8] sm:$0xff] %v49_v23 }
  0x8c   :  { %54 = vst [vmem:[%s126_s3 + $0x10] sm:$0xff] %v50_v25 }
  0x8d   :  { %55 = vst [vmem:[%s126_s3 + $0x18] sm:$0xff] %v51_v26 }

</bundles_post_ra>
